<compile_context>
chip_gen: v7x
topology: tpu7x:2x2x1
jax: 0.10.0
libtpu: 0.0.40
codegen_flags: <defaults>
</compile_context>

<pallas_src>
import functools

import jax
import jax.numpy as jnp
from jax.experimental import pallas as pl
from jax.experimental.pallas import tpu as pltpu


def _persistence_kernel(last_ref, o_ref, *, pred_len):
    # last_ref: (tb, c_out)            -- last timestep's final c_out features.
    # o_ref:    (tb, pred_len * c_out) -- lane-dense flattened output tile.
    # Replicate the c_out-wide row pred_len times along the lane axis and store
    # densely. No VALU/EUP work; the kernel is pure data movement.
    o_ref[...] = jnp.tile(last_ref[...], (1, pred_len)).astype(o_ref.dtype)


def _choose_batch_tile(b, lane_elems, itemsize, target_bytes=2 << 20):
    """Pick a legal batch (sublane) tile keeping each output block <= target_bytes.

    Returns either the full batch extent (always a legal block shape) or a
    multiple of 8 (legal sublane block size), so the (8, 128) block-shape rule
    is respected without requiring the lane dim to be tiled.
    """
    row_bytes = max(lane_elems * itemsize, 1)
    cap = max(1, target_bytes // row_bytes)
    if b <= cap or b <= 8:
        return b
    return max(8, (cap // 8) * 8)


def persistence_forward(x_enc, *, pred_len, c_out):
    """Pallas implementation of the Persistence model forward pass.

    x_enc: [B, seq_len, enc_in] float array.
    returns: [B, pred_len, c_out] array (same dtype as x_enc).
    """
    b, seq_len, c_in = x_enc.shape
    assert c_out <= c_in
    del seq_len  # only the last timestep is used

    # Slice the only data the op consumes before entering Pallas.
    last = x_enc[:, -1, c_in - c_out:]          # (B, c_out)

    lane = pred_len * c_out                      # lane-dense output width
    tb = _choose_batch_tile(b, lane, jnp.dtype(x_enc.dtype).itemsize)
    grid = (pl.cdiv(b, tb),)

    kernel = functools.partial(_persistence_kernel, pred_len=pred_len)

    out_flat = pl.pallas_call(
        kernel,
        out_shape=jax.ShapeDtypeStruct((b, lane), x_enc.dtype),
        grid=grid,
        in_specs=[pl.BlockSpec((tb, c_out), lambda i: (i, 0))],
        out_specs=pl.BlockSpec((tb, lane), lambda i: (i, 0)),
        compiler_params=pltpu.CompilerParams(
            dimension_semantics=("parallel",),
        ),
    )(last)

    # Free reshape: [B, pred_len*c_out] and [B, pred_len, c_out] share the same
    # row-major memory layout.
    return out_flat.reshape(b, pred_len, c_out)


def persistence_reference(x_enc, *, pred_len, c_out):
    """Pure-JAX reference matching the PyTorch semantics exactly."""
    last = x_enc[:, -1:, -c_out:]
    return jnp.tile(last, (1, pred_len, 1))


if __name__ == "__main__":
    # Small shapes consistent with the module's forward:
    # batch=2, seq_len=8, enc_in=4, pred_len=4, c_out=3
    B, SEQ_LEN, ENC_IN = 2, 8, 4
    PRED_LEN, C_OUT = 4, 3

    key = jax.random.PRNGKey(0)
    x_enc = jax.random.normal(key, (B, SEQ_LEN, ENC_IN), dtype=jnp.float32)

    out = persistence_forward(x_enc, pred_len=PRED_LEN, c_out=C_OUT)
    out = jax.block_until_ready(out)

    ref = persistence_reference(x_enc, pred_len=PRED_LEN, c_out=C_OUT)
    assert out.shape == (B, PRED_LEN, C_OUT), out.shape
    assert jnp.allclose(out, ref), "mismatch vs reference"

    print("KERNEL_OK")
</pallas_src>

<mosaic_0001>
module attributes {stable_mosaic.version = 11 : i64} {
  func.func @_persistence_kernel(%arg0: i32, %arg1: memref<2x3xf32, #tpu.memory_space<vmem>>, %arg2: memref<2x12xf32, #tpu.memory_space<vmem>>) attributes {dimension_semantics = [#tpu.dimension_semantics<parallel>], iteration_bounds = array<i64: 1>, scalar_prefetch = 0 : i64, scratch_operands = 0 : i64, tpu.core_type = #tpu.core_type<tc>, window_params = [{transform_indices = @transform_0, window_bounds = array<i64: 2, 3>}, {transform_indices = @transform_1, window_bounds = array<i64: 2, 12>}]} {
    %c0 = arith.constant 0 : index
    %c0_0 = arith.constant 0 : index
    %0 = vector.load %arg1[%c0, %c0_0] : memref<2x3xf32, #tpu.memory_space<vmem>>, vector<2x3xf32>
    %1 = tpu.concatenate %0, %0, %0, %0 in 1 : vector<2x3xf32>, vector<2x3xf32>, vector<2x3xf32>, vector<2x3xf32> -> vector<2x12xf32>
    %c0_1 = arith.constant 0 : index
    %c0_2 = arith.constant 0 : index
    %2 = vector.load %arg2[%c0_1, %c0_2] : memref<2x12xf32, #tpu.memory_space<vmem>>, vector<2x12xf32>
    tpu.vector_store %arg2[%c0_1, %c0_2], %1 {strides = array<i32>} : memref<2x12xf32, #tpu.memory_space<vmem>>, vector<2x12xf32>,
    return
  }
  func.func @transform_0(%arg0: i32) -> (i32, i32) {
    %c0_i32 = arith.constant 0 : i32
    %c0_i32_0 = arith.constant 0 : i32
    return %arg0, %c0_i32 : i32, i32
  }
  func.func @transform_1(%arg0: i32) -> (i32, i32) {
    %c0_i32 = arith.constant 0 : i32
    %c0_i32_0 = arith.constant 0 : i32
    return %arg0, %c0_i32 : i32, i32
  }
}

</mosaic_0001>

<bundles_post_ra>
// kernel: tpu_custom_call.1
= control target key start
LH: loop header
LB: loop body
LE: loop exit
PB: predicated region body
PF: predicated region fallthrough
CT: control target
= control target key end

     0   :  { %6 = vsyncpa [#allocation3], 0  ;;  %s147_s0 = inlined_call_operand.hbm [shape: f32[2,3], index: 0, kind: input, shape index: {}]   ;;  %s148_s1 = inlined_call_operand.hbm [shape: f32[2,12], index: 1, kind: output, shape index: {}]  }
   0x1   :  { %7 = vsyncpa [#allocation4], 0  ;;  %s108_s6 = smov [#allocation2]   ;;  %s60_s10 = scalar_lea.hbm %s147_s0, 32 }
   0x2   :  { %s14_s7 = sshll.u32 %s108_s6, 4  ;;  %p61_p0 = scmp.ne.s32.totalorder %s147_s0, %s60_s10  ;;  %s15_s7 = int_to_ptr.vmem [resolvable:$true] %s14_s7 }
   0x3   :  { %p64_p1 = scmp.lt.u32.totalorder %s60_s10, %s147_s0 }
   0x5   :  { %p66_p2 = pnand %p64_p1, %p61_p0 }
   0x7   :  { %69 = shalt.err (!%p66_p2)
}
   0x8   :  { %s70_s15 = scalar_lea.vmem %s15_s7, 32  ;;  %p75_p4 = scmp.lt.s32.totalorder %s15_s7, %s15_s7 }
   0x9   :  { %p71_p3 = scmp.ne.s32.totalorder %s15_s7, %s70_s15  ;;  %p76_p5 = scmp.lt.s32.totalorder %s70_s15, %s70_s15 }
   0xb   :  { %p77_p6 = por %p76_p5, %p75_p4 }
   0xd   :  { %p78_p7 = pnand %p77_p6, %p71_p3 }
   0xf   :  { %81 = shalt.err (!%p78_p7)
}
  0x10   :  { %17 = dma.hbm_to_vmem [thread:$0]  %s147_s0, 32, %s15_s7, [#allocation3]  }
  0x11   :  { %104 = dma.done.wait [#allocation3], 32  }
  0x12   :  { %105 = vsyncadd [#allocation3], 4294967264  ;;  %v21_v0 = vld [vmem:[#allocation2] sm:$0x3]  ;;  %s109_s18 = smov 3   ;;  %s110_s19 = smov 9  }
  0x13   :  { %23 = vrot.lane.b32.xlu0 %v21_v0, %s109_s18  ;;  %29 = vrot.lane.b32.xlu1 %v21_v0, %s110_s19  ;;  %s111_s20 = smov 6   ;;  %vm32_vm0 = vcmask 23552   ;;  %vm34_vm1 = vcmask 48128   ;;  %s112_s21 = smov [#allocation5]   ;;  %vm36_vm2 = vcmask 72704   ;;  %vm38_vm3 = vcmask 91136  }
  0x14   :  { %s46_s22 = sshll.u32 %s112_s21, 4  ;;  %s47_s22 = int_to_ptr.vmem [resolvable:$true] %s46_s22 }
  0x15   :  { %s82_s0 = scalar_lea.vmem %s47_s22, 32  ;;  %p87_p9 = scmp.lt.s32.totalorder %s47_s22, %s47_s22 }
  0x16   :  { %p83_p8 = scmp.ne.s32.totalorder %s47_s22, %s82_s0  ;;  %p88_p10 = scmp.lt.s32.totalorder %s82_s0, %s82_s0 }
  0x17   :  { %26 = vrot.lane.b32.xlu0 %v21_v0, %s111_s20 }
  0x18   :  { %p89_p11 = por %p88_p10, %p87_p9 }
  0x1a   :  { %p90_p12 = pnand %p89_p11, %p83_p8 }
  0x85   :  { %v24_v1 = vpop.permute.xlu0 %23  ;;  %v30_v2 = vpop.permute.xlu1 %29 }
  0x86   :  { %v33_v3 = vsel %vm32_vm0, %v21_v0, %v24_v1 }
  0x89   :  { %v27_v4 = vpop.permute.xlu0 %26 }
  0x8a   :  { %v35_v5 = vsel %vm34_vm1, %v33_v3, %v27_v4 }
  0x8b   :  { %v37_v6 = vsel %vm36_vm2, %v35_v5, %v30_v2 }
  0x8c   :  { %39 = vst.msk [vmem:[#allocation5] sm:$0x3] %vm38_vm3, %v37_v6 }
  0x8d   :  { %93 = shalt.err (!%p90_p12)
}
  0x8e   :  { %s94_s25 = scalar_lea.hbm %s148_s1, 32 }
  0x8f   :  { %p95_p13 = scmp.ne.s32.totalorder %s148_s1, %s94_s25  ;;  %p98_p0 = scmp.lt.u32.totalorder %s94_s25, %s148_s1 }
  0x91   :  { %p100_p1 = pnand %p98_p0, %p95_p13 }
  0x93   :  { %103 = shalt.err (!%p100_p1)
}
  0x94   :  { %49 = dma.vmem_to_hbm [thread:$0]  %s47_s22, 32, %s148_s1, [#allocation4]  }
  0x95   :  { %106 = dma.done.wait [#allocation4], 32  }
  0x96   :  { %107 = vsyncadd [#allocation4], 4294967264 }
  0x97   :  { %53 = vsyncpa [#allocation3], 1 }
  0x98   :  { %54 = vsyncpa [#allocation4], 1 }

</bundles_post_ra>
